<compile_context>
chip_gen: v6e
topology: v6e:2x2x1
jax: 0.10.0
libtpu: 0.0.40
codegen_flags: <defaults>
</compile_context>

<pallas_src>
import jax
import jax.numpy as jnp
import numpy as np
from jax.experimental import pallas as pl
from jax.experimental.pallas import tpu as pltpu


def _copy_kernel(x_ref, o_ref):
    # Identity hot path: one VMEM tile in, same tile out (in-place via aliasing).
    o_ref[...] = x_ref[...]


def _resolve_shape(total, shape):
    """Emulate torch .view shape resolution (supports a single -1)."""
    shape = list(shape)
    if -1 in shape:
        idx = shape.index(-1)
        known = 1
        for i, s in enumerate(shape):
            if i != idx:
                known *= int(s)
        assert known > 0 and total % known == 0, "invalid view shape"
        shape[idx] = total // known
    prod = 1
    for s in shape:
        prod *= int(s)
    assert prod == total, "view shape incompatible with number of elements"
    return tuple(int(s) for s in shape)


_LANE_CANDIDATES = (4096, 2048, 1024, 512, 256, 128)
# ~4 MiB per block: with double-buffered in + out this is ~16 MiB of VMEM,
# safely inside v7x's 64 MiB physical VMEM and the 32 MiB limit we request.
_BLOCK_BYTE_BUDGET = 4 * 1024 * 1024


def _choose_tiling(total, itemsize):
    """Pick (lane_width, pad_elems, rows, blk_rows) for a lane-dense copy."""
    lane = None
    for c in _LANE_CANDIDATES:
        if total % c == 0:
            lane = c
            break
    pad = 0
    if lane is None:
        # Element count not a multiple of 128: pad a small tail instead of
        # falling back to a single giant (1, total) block.
        lane = 128
        pad = (-total) % 128
    padded = total + pad
    rows = padded // lane

    # Sub-32-bit dtypes pack along sublanes: 8 rows (f32), 16 (bf16), 32 (i8/fp8).
    min_sub = max(8, 32 // max(1, itemsize))

    blk_rows = (_BLOCK_BYTE_BUDGET // (lane * itemsize)) // min_sub * min_sub
    blk_rows = max(min_sub, blk_rows)
    if blk_rows >= rows:
        blk_rows = rows  # full-extent block is always a legal block shape
    return lane, pad, rows, blk_rows


def pallas_reshape(x, *shape):
    """Equivalent of _Reshape(*shape)(x) == x.view(shape)."""
    total = int(x.size)
    target = _resolve_shape(total, shape)
    itemsize = jnp.dtype(x.dtype).itemsize

    lane, pad, rows, blk_rows = _choose_tiling(total, itemsize)

    flat = x.reshape(-1)                # metadata-only glue, row-major order
    if pad:
        flat = jnp.pad(flat, (0, pad))  # tiny tail pad when total % 128 != 0
    slab = flat.reshape(rows, lane)     # lane-dense 2-D slab

    grid = (pl.cdiv(rows, blk_rows),)
    out = pl.pallas_call(
        _copy_kernel,
        out_shape=jax.ShapeDtypeStruct((rows, lane), x.dtype),
        grid=grid,
        in_specs=[pl.BlockSpec((blk_rows, lane), lambda i: (i, 0))],
        out_specs=pl.BlockSpec((blk_rows, lane), lambda i: (i, 0)),
        # In-place identity copy: output aliases the input HBM buffer, so no
        # second HBM allocation / writeback of a fresh buffer is required.
        input_output_aliases={0: 0},
        compiler_params=pltpu.CompilerParams(
            dimension_semantics=("parallel",),   # lets v7x shard grid over 2 TCs
            vmem_limit_bytes=32 * 1024 * 1024,   # multi-MiB blocks OK on v5e too
        ),
        cost_estimate=pl.CostEstimate(
            flops=0,
            transcendentals=0,
            bytes_accessed=2 * total * itemsize,
        ),
    )(slab)

    if pad:
        out = out.reshape(-1)[:total]
    return out.reshape(target)


if __name__ == "__main__":
    key = jax.random.PRNGKey(0)
    # Input consistent with a small NCHW tensor: batch=2, channels=4, 16x16.
    x = jax.random.normal(key, (2, 4, 16, 16), dtype=jnp.float32)
    ref = np.asarray(x).reshape(2, 4, -1)  # reference (same row-major order as .view)

    # _Reshape(2, 4, -1): collapse spatial dims, like x.view(2, 4, -1) in torch.
    y = pallas_reshape(x, 2, 4, -1)
    y = jax.block_until_ready(y)

    assert y.shape == (2, 4, 256), y.shape
    assert np.array_equal(np.asarray(y), ref), "mismatch vs reference reshape"

    # Also exercise the padded-tail path (element count not a multiple of 128).
    x2 = jax.random.normal(jax.random.PRNGKey(1), (3, 5, 7), dtype=jnp.float32)
    ref2 = np.asarray(x2).reshape(-1)
    y2 = jax.block_until_ready(pallas_reshape(x2, -1))
    assert y2.shape == (105,), y2.shape
    assert np.array_equal(np.asarray(y2), ref2), "mismatch on padded-tail path"

    print("KERNEL_OK")
</pallas_src>

<mosaic_0001>
module attributes {stable_mosaic.version = 11 : i64} {
  func.func @_copy_kernel(%arg0: i32, %arg1: memref<1x2048xf32, #tpu.memory_space<vmem>>, %arg2: memref<1x2048xf32, #tpu.memory_space<vmem>>) attributes {dimension_semantics = [#tpu.dimension_semantics<parallel>], iteration_bounds = array<i64: 1>, scalar_prefetch = 0 : i64, scratch_operands = 0 : i64, tpu.core_type = #tpu.core_type<tc>, window_params = [{transform_indices = @transform_0, window_bounds = array<i64: 1, 2048>}, {transform_indices = @transform_1, window_bounds = array<i64: 1, 2048>}]} {
    %c0 = arith.constant 0 : index
    %c0_0 = arith.constant 0 : index
    %0 = vector.load %arg1[%c0, %c0_0] : memref<1x2048xf32, #tpu.memory_space<vmem>>, vector<1x2048xf32>
    %c0_1 = arith.constant 0 : index
    %c0_2 = arith.constant 0 : index
    %1 = vector.load %arg2[%c0_1, %c0_2] : memref<1x2048xf32, #tpu.memory_space<vmem>>, vector<1x2048xf32>
    tpu.vector_store %arg2[%c0_1, %c0_2], %0 {strides = array<i32>} : memref<1x2048xf32, #tpu.memory_space<vmem>>, vector<1x2048xf32>,
    return
  }
  func.func @transform_0(%arg0: i32) -> (i32, i32) {
    %c0_i32 = arith.constant 0 : i32
    %c0_i32_0 = arith.constant 0 : i32
    return %arg0, %c0_i32 : i32, i32
  }
  func.func @transform_1(%arg0: i32) -> (i32, i32) {
    %c0_i32 = arith.constant 0 : i32
    %c0_i32_0 = arith.constant 0 : i32
    return %arg0, %c0_i32 : i32, i32
  }
}

</mosaic_0001>

<bundles_post_ra>
// kernel: tpu_custom_call.1
= control target key start
LH: loop header
LB: loop body
LE: loop exit
PB: predicated region body
PF: predicated region fallthrough
CT: control target
= control target key end

     0   :  { %6 = vsyncpa [#allocation3], 0  ;;  %s104_s0 = inlined_call_operand.hbm [shape: f32[1,2048], index: 0, kind: input, shape index: {}, may-alias: {0,1}]   ;;  %s105_s1 = inlined_call_operand.hbm [shape: f32[1,2048], index: 1, kind: output, shape index: {}, may-alias: {0,1}]  }
   0x1   :  { %7 = vsyncpa [#allocation4], 0  ;;  %s86_s6 = smov [#allocation2]  }
   0x2   :  { %s14_s7 = sshll.u32 %s86_s6, 4  ;;  %s15_s7 = int_to_ptr.vmem [resolvable:$true] %s14_s7 }
   0x3   :  { %s50_s8 = scalar_lea.vmem %s15_s7, 256  ;;  %p55_p1 = scmp.lt.s32.totalorder %s15_s7, %s15_s7 }
   0x4   :  { %p51_p0 = scmp.ne.s32.totalorder %s15_s7, %s50_s8  ;;  %p56_p2 = scmp.lt.s32.totalorder %s50_s8, %s50_s8 }
   0x6   :  { %p57_p3 = por %p56_p2, %p55_p1 }
   0x8   :  { %p58_p4 = pnand %p57_p3, %p51_p0 }
   0xa   :  { %61 = shalt.err (!%p58_p4)
}
   0xb   :  { %17 = dma.hbm_to_vmem [thread:$0]  %s104_s0, 256, %s15_s7, [#allocation3]  }
   0xc   :  { %82 = dma.done.wait [#allocation3], 256  }
   0xd   :  { %83 = vsyncadd [#allocation3], 4294967040  ;;  %s87_s11 = smov [#allocation5]   ;;  %v21_v0 = vld [vmem:[#allocation2] sm:$0xff]  ;;  %v22_v1 = vld [vmem:[#allocation2 + $0x8] sm:$0xff] }
   0xe   :  { %s31_s12 = sshll.u32 %s87_s11, 4  ;;  %23 = vst [vmem:[#allocation5] sm:$0xff] %v21_v0  ;;  %24 = vst [vmem:[#allocation5 + $0x8] sm:$0xff] %v22_v1  ;;  %s32_s12 = int_to_ptr.vmem [resolvable:$true] %s31_s12 }
   0xf   :  { %s62_s13 = scalar_lea.vmem %s32_s12, 256  ;;  %p67_p6 = scmp.lt.s32.totalorder %s32_s12, %s32_s12 }
  0x10   :  { %p63_p5 = scmp.ne.s32.totalorder %s32_s12, %s62_s13  ;;  %p68_p7 = scmp.lt.s32.totalorder %s62_s13, %s62_s13 }
  0x12   :  { %p69_p8 = por %p68_p7, %p67_p6 }
  0x14   :  { %p70_p9 = pnand %p69_p8, %p63_p5 }
  0x16   :  { %73 = shalt.err (!%p70_p9)
}
  0x17   :  { %34 = dma.vmem_to_hbm [thread:$0]  %s32_s12, 256, %s105_s1, [#allocation4]  }
  0x18   :  { %84 = dma.done.wait [#allocation4], 256  }
  0x19   :  { %85 = vsyncadd [#allocation4], 4294967040 }
  0x1a   :  { %38 = vsyncpa [#allocation3], 1 }
  0x1b   :  { %39 = vsyncpa [#allocation4], 1 }

</bundles_post_ra>
